<compile_context>
chip_gen: v7x
topology: tpu7x:2x2x1
jax: 0.10.0
libtpu: 0.0.40
codegen_flags: <defaults>
</compile_context>

<pallas_src>
import jax
import jax.numpy as jnp
from jax.experimental import pallas as pl
from jax.experimental.pallas import tpu as pltpu

# ----------------------------- model dims (small, synthetic) -----------------
B     = 2        # batch
B_PAD = 8        # batch padded to a full sublane group
T     = 8        # question length (tokens)
V     = 64       # vocab size
EW    = 32       # word-embedding size
H     = 16       # lstm_hidden_size  -> attn_ques dim = 2*H
E     = 32       # entity embedding_size
N     = 128      # number of KB entities (lane-width aligned)
M     = 4        # initial memory slots (entity ids) per example
HH    = 2 * H    # 32
NEG_INF = -1e9


# ----------------------------- fused kernel ------------------------------------
def fused_kernel(q_ref, w_enc_ref, emb_ref, emb_t_ref, w_k_t_ref,
                 wp_h_ref, wp_e_ref, bp_ref, mask0_ref,
                 gumbel_ref, keep_ref, adj_ref, logits_ref):
    # encoder head (stands in for the KBQA bi-LSTM): h = tanh(q_mean @ w_enc)
    h = jnp.tanh(jnp.dot(q_ref[...], w_enc_ref[...],
                         preferred_element_type=jnp.float32))            # (B_PAD, HH)

    # entity keys, materialized lane-dense once: keys_t = w_k^T @ ent_emb^T -> (HH, N)
    keys_t = jnp.dot(w_k_t_ref[...], emb_t_ref[...],
                     preferred_element_type=jnp.float32)                 # (HH, N)

    emb  = emb_ref[...]                                                  # (N, E)
    adj  = adj_ref[...]                                                  # (N, N)
    wp_h = wp_h_ref[...]                                                 # (HH, HH)
    wp_e = wp_e_ref[...]                                                 # (E, HH)
    bp   = bp_ref[...]                                                   # (1, HH)

    def score(hh, mask):
        # KBQA scoring: logits[b, n] = <h[b], keys[n]>, masked to current memory.
        s = jnp.dot(hh, keys_t, preferred_element_type=jnp.float32)      # (B_PAD, N)
        return jnp.where(mask > 0.0, s, NEG_INF)

    mask = mask0_ref[...]
    logits = score(h, mask)

    # two "walking" hops, statically unrolled; all state stays in vregs.
    for t in range(2):
        # gumbel_softmax(hard=True) forward = one-hot argmax of logits + gumbel noise
        z = logits + gumbel_ref[t]                                       # (B_PAD, N)
        zmax = jnp.max(z, axis=1, keepdims=True)
        iota = jax.lax.broadcasted_iota(jnp.int32, z.shape, 1)
        idx = jnp.min(jnp.where(z >= zmax, iota, N), axis=1, keepdims=True)
        onehot = (iota == idx).astype(jnp.float32)                       # hard one-hot

        # entity embedding lookup + synthetic get_memory() (KB adjacency walk);
        # kept as tiny one-hot matmuls (straight-through-compatible form).
        ent = jnp.dot(onehot, emb, preferred_element_type=jnp.float32)   # (B_PAD, E)
        nxt_mask = jnp.dot(onehot, adj, preferred_element_type=jnp.float32)  # (B_PAD, N)

        # attn_ques = dropout(tanh([h, ent] @ W_proj^T + b), p=0.5)
        pre = (jnp.dot(h, wp_h, preferred_element_type=jnp.float32)
               + jnp.dot(ent, wp_e, preferred_element_type=jnp.float32) + bp)
        h = jnp.tanh(pre) * keep_ref[t]                                  # inverted dropout

        mask = nxt_mask
        logits = score(h, mask)                                          # KBQA.forward2

    logits_ref[...] = logits                                             # lane-dense store


# ----------------------------- pallas plumbing --------------------------------
def _spec(shape):
    nd = len(shape)
    # whole-array block (last two dims equal the full array dims -> (8,128) rule ok)
    return pl.BlockSpec(shape, lambda i, nd=nd: (0,) * nd)


def _fused_call(*args):
    out_shape = jax.ShapeDtypeStruct((B_PAD, N), jnp.float32)
    return pl.pallas_call(
        fused_kernel,
        grid=(1,),
        in_specs=[_spec(a.shape) for a in args],
        out_specs=_spec(out_shape.shape),
        out_shape=out_shape,
        compiler_params=pltpu.CompilerParams(dimension_semantics=("arbitrary",)),
    )(*args)


# ----------------------------- parameters -------------------------------------
def init_params(key):
    ks = jax.random.split(key, 6)
    s = 0.1
    word_emb   = jax.random.normal(ks[0], (V, EW), jnp.float32) * s
    w_enc      = jax.random.normal(ks[1], (EW, HH), jnp.float32) * s
    entity_emb = jax.random.normal(ks[2], (N, E), jnp.float32) * s
    w_k        = jax.random.normal(ks[3], (E, HH), jnp.float32) * s
    # nn.Linear(2H + E, 2H): weight (out, in), bias (out,)
    w_proj     = jax.random.normal(ks[4], (HH, HH + E), jnp.float32) * s
    b_proj     = jax.random.normal(ks[5], (HH,), jnp.float32) * s
    wp_h = w_proj[:, :HH].T          # (2H, 2H)  — x @ W^T split on the concat axis
    wp_e = w_proj[:, HH:].T          # (E, 2H)
    bp   = b_proj.reshape(1, HH)
    # deterministic synthetic KB adjacency used by get_memory()
    ii = jnp.arange(N)[:, None]
    jj = jnp.arange(N)[None, :]
    adj = (((ii * 3 + jj) % 5) == 0).astype(jnp.float32)                 # (N, N)
    return dict(word_emb=word_emb, w_enc=w_enc,
                entity_emb=entity_emb, entity_emb_t=entity_emb.T,        # (E, N)
                w_k_t=w_k.T,                                             # (HH, E)
                wp_h=wp_h, wp_e=wp_e, bp=bp, adj=adj)


# ----------------------------- forward pass ------------------------------------
@jax.jit
def walking_memory_forward(params, memory, question, question_lengths, rng):
    word_emb = params["word_emb"]

    # ---- JAX glue (traced into the same jit; one dispatch overall) ----
    # TODO(synk): reference KBQA uses a bi-LSTM question encoder whose internals
    # are not in the provided source; a length-masked mean + dense-tanh stands in.
    q_tok = word_emb[question]                                           # (B, T, EW)
    valid = (jnp.arange(T)[None, :] < question_lengths[:, None]).astype(jnp.float32)
    q_mean = (q_tok * valid[..., None]).sum(axis=1) / jnp.maximum(
        question_lengths[:, None].astype(jnp.float32), 1.0)              # (B, EW)
    q_mean_p = jnp.zeros((B_PAD, EW), jnp.float32).at[:B].set(q_mean)

    # initial memory -> entity mask, padded to B_PAD rows
    mask0 = jnp.clip(jax.nn.one_hot(memory, N, dtype=jnp.float32).sum(1), 0.0, 1.0)
    mask0_p = jnp.zeros((B_PAD, N), jnp.float32).at[:B].set(mask0)

    # batched per-hop RNG: one gumbel draw and one dropout keep-mask draw
    kg, kd = jax.random.split(rng, 2)
    gumbel = -jnp.log(-jnp.log(
        jax.random.uniform(kg, (2, B_PAD, N), minval=1e-6, maxval=1.0)))
    keep = (jax.random.uniform(kd, (2, B_PAD, HH)) >= 0.5).astype(jnp.float32) * 2.0

    logits_p = _fused_call(
        q_mean_p, params["w_enc"], params["entity_emb"], params["entity_emb_t"],
        params["w_k_t"], params["wp_h"], params["wp_e"], params["bp"],
        mask0_p, gumbel, keep, params["adj"])
    return logits_p[:B]


# ----------------------------- main --------------------------------------------
if __name__ == "__main__":
    key = jax.random.PRNGKey(0)
    kp, km, kq, kl, kr = jax.random.split(key, 5)
    params = init_params(kp)

    memory = jax.random.randint(km, (B, M), 0, N, dtype=jnp.int32)
    question = jax.random.randint(kq, (B, T), 0, V, dtype=jnp.int32)
    question_lengths = jax.random.randint(kl, (B,), 1, T + 1, dtype=jnp.int32)

    logits = walking_memory_forward(params, memory, question, question_lengths, kr)
    jax.block_until_ready(logits)
    assert logits.shape == (B, N) and logits.dtype == jnp.float32
    assert bool(jnp.all(jnp.isfinite(logits)))
    print("KERNEL_OK")
</pallas_src>

<mosaic_0001>
module attributes {stable_mosaic.version = 11 : i64} {
  func.func @fused_kernel(%arg0: i32, %arg1: memref<8x32xf32, #tpu.memory_space<vmem>>, %arg2: memref<32x32xf32, #tpu.memory_space<vmem>>, %arg3: memref<128x32xf32, #tpu.memory_space<vmem>>, %arg4: memref<32x128xf32, #tpu.memory_space<vmem>>, %arg5: memref<32x32xf32, #tpu.memory_space<vmem>>, %arg6: memref<32x32xf32, #tpu.memory_space<vmem>>, %arg7: memref<32x32xf32, #tpu.memory_space<vmem>>, %arg8: memref<1x32xf32, #tpu.memory_space<vmem>>, %arg9: memref<8x128xf32, #tpu.memory_space<vmem>>, %arg10: memref<2x8x128xf32, #tpu.memory_space<vmem>>, %arg11: memref<2x8x32xf32, #tpu.memory_space<vmem>>, %arg12: memref<128x128xf32, #tpu.memory_space<vmem>>, %arg13: memref<8x128xf32, #tpu.memory_space<vmem>>) attributes {dimension_semantics = [#tpu.dimension_semantics<arbitrary>], iteration_bounds = array<i64: 1>, scalar_prefetch = 0 : i64, scratch_operands = 0 : i64, tpu.core_type = #tpu.core_type<tc>, window_params = [{pipeline_mode = #tpu.pipeline_mode<synchronous>, transform_indices = @transform_0, window_bounds = array<i64: 8, 32>}, {pipeline_mode = #tpu.pipeline_mode<synchronous>, transform_indices = @transform_1, window_bounds = array<i64: 32, 32>}, {pipeline_mode = #tpu.pipeline_mode<synchronous>, transform_indices = @transform_2, window_bounds = array<i64: 128, 32>}, {pipeline_mode = #tpu.pipeline_mode<synchronous>, transform_indices = @transform_3, window_bounds = array<i64: 32, 128>}, {pipeline_mode = #tpu.pipeline_mode<synchronous>, transform_indices = @transform_4, window_bounds = array<i64: 32, 32>}, {pipeline_mode = #tpu.pipeline_mode<synchronous>, transform_indices = @transform_5, window_bounds = array<i64: 32, 32>}, {pipeline_mode = #tpu.pipeline_mode<synchronous>, transform_indices = @transform_6, window_bounds = array<i64: 32, 32>}, {pipeline_mode = #tpu.pipeline_mode<synchronous>, transform_indices = @transform_7, window_bounds = array<i64: 1, 32>}, {pipeline_mode = #tpu.pipeline_mode<synchronous>, transform_indices = @transform_8, window_bounds = array<i64: 8, 128>}, {pipeline_mode = #tpu.pipeline_mode<synchronous>, transform_indices = @transform_9, window_bounds = array<i64: 2, 8, 128>}, {pipeline_mode = #tpu.pipeline_mode<synchronous>, transform_indices = @transform_10, window_bounds = array<i64: 2, 8, 32>}, {pipeline_mode = #tpu.pipeline_mode<synchronous>, transform_indices = @transform_11, window_bounds = array<i64: 128, 128>}, {pipeline_mode = #tpu.pipeline_mode<synchronous>, transform_indices = @transform_12, window_bounds = array<i64: 8, 128>}]} {
    %c0 = arith.constant 0 : index
    %c0_0 = arith.constant 0 : index
    %0 = vector.load %arg1[%c0, %c0_0] : memref<8x32xf32, #tpu.memory_space<vmem>>, vector<8x32xf32>
    %c0_1 = arith.constant 0 : index
    %c0_2 = arith.constant 0 : index
    %1 = vector.load %arg2[%c0_1, %c0_2] : memref<32x32xf32, #tpu.memory_space<vmem>>, vector<32x32xf32>
    %cst = arith.constant dense<0.000000e+00> : vector<8x32xf32>
    %2 = tpu.matmul %0, %1, %cst {dimension_numbers = #tpu.dot_dimension_numbers<[1], [0], [0], [1], [0, 0, 1, 1], [], []>} : vector<8x32xf32>, vector<32x32xf32>, vector<8x32xf32> -> vector<8x32xf32>
    %3 = math.tanh %2 : vector<8x32xf32>
    %c0_3 = arith.constant 0 : index
    %c0_4 = arith.constant 0 : index
    %4 = vector.load %arg5[%c0_3, %c0_4] : memref<32x32xf32, #tpu.memory_space<vmem>>, vector<32x32xf32>
    %c0_5 = arith.constant 0 : index
    %c0_6 = arith.constant 0 : index
    %5 = vector.load %arg4[%c0_5, %c0_6] : memref<32x128xf32, #tpu.memory_space<vmem>>, vector<32x128xf32>
    %cst_7 = arith.constant dense<0.000000e+00> : vector<32x128xf32>
    %6 = tpu.matmul %4, %5, %cst_7 {dimension_numbers = #tpu.dot_dimension_numbers<[1], [0], [0], [1], [0, 0, 1, 1], [], []>} : vector<32x32xf32>, vector<32x128xf32>, vector<32x128xf32> -> vector<32x128xf32>
    %c0_8 = arith.constant 0 : index
    %c0_9 = arith.constant 0 : index
    %7 = vector.load %arg3[%c0_8, %c0_9] : memref<128x32xf32, #tpu.memory_space<vmem>>, vector<128x32xf32>
    %c0_10 = arith.constant 0 : index
    %c0_11 = arith.constant 0 : index
    %8 = vector.load %arg12[%c0_10, %c0_11] : memref<128x128xf32, #tpu.memory_space<vmem>>, vector<128x128xf32>
    %c0_12 = arith.constant 0 : index
    %c0_13 = arith.constant 0 : index
    %9 = vector.load %arg6[%c0_12, %c0_13] : memref<32x32xf32, #tpu.memory_space<vmem>>, vector<32x32xf32>
    %c0_14 = arith.constant 0 : index
    %c0_15 = arith.constant 0 : index
    %10 = vector.load %arg7[%c0_14, %c0_15] : memref<32x32xf32, #tpu.memory_space<vmem>>, vector<32x32xf32>
    %c0_16 = arith.constant 0 : index
    %c0_17 = arith.constant 0 : index
    %11 = vector.load %arg8[%c0_16, %c0_17] : memref<1x32xf32, #tpu.memory_space<vmem>>, vector<1x32xf32>
    %c0_18 = arith.constant 0 : index
    %c0_19 = arith.constant 0 : index
    %12 = vector.load %arg9[%c0_18, %c0_19] : memref<8x128xf32, #tpu.memory_space<vmem>>, vector<8x128xf32>
    %cst_20 = arith.constant dense<0.000000e+00> : vector<8x128xf32>
    %13 = tpu.matmul %3, %6, %cst_20 {dimension_numbers = #tpu.dot_dimension_numbers<[1], [0], [0], [1], [0, 0, 1, 1], [], []>} : vector<8x32xf32>, vector<32x128xf32>, vector<8x128xf32> -> vector<8x128xf32>
    %cst_21 = arith.constant 0.000000e+00 : f32
    %14 = vector.broadcast %cst_21 : f32 to vector<8x128xf32>
    %15 = arith.cmpf ogt, %12, %14 : vector<8x128xf32>
    %cst_22 = arith.constant -1.000000e+09 : f32
    %16 = vector.broadcast %cst_22 : f32 to vector<8x128xf32>
    %17 = arith.select %15, %13, %16 : vector<8x128xi1>, vector<8x128xf32>
    %c0_23 = arith.constant 0 : index
    %c0_24 = arith.constant 0 : index
    %c0_25 = arith.constant 0 : index
    %18 = vector.load %arg10[%c0_23, %c0_24, %c0_25] : memref<2x8x128xf32, #tpu.memory_space<vmem>>, vector<1x8x128xf32>
    %19 = vector.shape_cast %18 : vector<1x8x128xf32> to vector<8x128xf32>
    %20 = arith.addf %17, %19 : vector<8x128xf32>
    %cst_26 = arith.constant dense<0xFF800000> : vector<8xf32>
    %21 = vector.multi_reduction <maximumf>, %20, %cst_26 [1] : vector<8x128xf32> to vector<8xf32>
    %22 = vector.shape_cast %21 : vector<8xf32> to vector<8x1xf32>
    %23 = tpu.iota {dimensions = array<i32: 1>} : vector<8x128xi32>
    %24 = vector.broadcast %22 : vector<8x1xf32> to vector<8x128xf32>
    %25 = arith.cmpf oge, %20, %24 : vector<8x128xf32>
    %c128_i32 = arith.constant 128 : i32
    %26 = vector.broadcast %c128_i32 : i32 to vector<8x128xi32>
    %27 = arith.select %25, %23, %26 : vector<8x128xi1>, vector<8x128xi32>
    %cst_27 = arith.constant dense<2147483647> : vector<8xi32>
    %28 = vector.multi_reduction <minsi>, %27, %cst_27 [1] : vector<8x128xi32> to vector<8xi32>
    %29 = vector.shape_cast %28 : vector<8xi32> to vector<8x1xi32>
    %30 = vector.broadcast %29 : vector<8x1xi32> to vector<8x128xi32>
    %31 = arith.cmpi eq, %23, %30 : vector<8x128xi32>
    %32 = arith.extui %31 : vector<8x128xi1> to vector<8x128xi32>
    %33 = arith.sitofp %32 : vector<8x128xi32> to vector<8x128xf32>
    %cst_28 = arith.constant dense<0.000000e+00> : vector<8x32xf32>
    %34 = tpu.matmul %33, %7, %cst_28 {dimension_numbers = #tpu.dot_dimension_numbers<[1], [0], [0], [1], [0, 0, 1, 1], [], []>} : vector<8x128xf32>, vector<128x32xf32>, vector<8x32xf32> -> vector<8x32xf32>
    %cst_29 = arith.constant dense<0.000000e+00> : vector<8x128xf32>
    %35 = tpu.matmul %33, %8, %cst_29 {dimension_numbers = #tpu.dot_dimension_numbers<[1], [0], [0], [1], [0, 0, 1, 1], [], []>} : vector<8x128xf32>, vector<128x128xf32>, vector<8x128xf32> -> vector<8x128xf32>
    %cst_30 = arith.constant dense<0.000000e+00> : vector<8x32xf32>
    %36 = tpu.matmul %3, %9, %cst_30 {dimension_numbers = #tpu.dot_dimension_numbers<[1], [0], [0], [1], [0, 0, 1, 1], [], []>} : vector<8x32xf32>, vector<32x32xf32>, vector<8x32xf32> -> vector<8x32xf32>
    %cst_31 = arith.constant dense<0.000000e+00> : vector<8x32xf32>
    %37 = tpu.matmul %34, %10, %cst_31 {dimension_numbers = #tpu.dot_dimension_numbers<[1], [0], [0], [1], [0, 0, 1, 1], [], []>} : vector<8x32xf32>, vector<32x32xf32>, vector<8x32xf32> -> vector<8x32xf32>
    %38 = arith.addf %36, %37 : vector<8x32xf32>
    %39 = vector.broadcast %11 : vector<1x32xf32> to vector<8x32xf32>
    %40 = arith.addf %38, %39 : vector<8x32xf32>
    %41 = math.tanh %40 : vector<8x32xf32>
    %c0_32 = arith.constant 0 : index
    %c0_33 = arith.constant 0 : index
    %c0_34 = arith.constant 0 : index
    %42 = vector.load %arg11[%c0_32, %c0_33, %c0_34] : memref<2x8x32xf32, #tpu.memory_space<vmem>>, vector<1x8x32xf32>
    %43 = vector.shape_cast %42 : vector<1x8x32xf32> to vector<8x32xf32>
    %44 = arith.mulf %41, %43 : vector<8x32xf32>
    %cst_35 = arith.constant dense<0.000000e+00> : vector<8x128xf32>
    %45 = tpu.matmul %44, %6, %cst_35 {dimension_numbers = #tpu.dot_dimension_numbers<[1], [0], [0], [1], [0, 0, 1, 1], [], []>} : vector<8x32xf32>, vector<32x128xf32>, vector<8x128xf32> -> vector<8x128xf32>
    %cst_36 = arith.constant 0.000000e+00 : f32
    %46 = vector.broadcast %cst_36 : f32 to vector<8x128xf32>
    %47 = arith.cmpf ogt, %35, %46 : vector<8x128xf32>
    %cst_37 = arith.constant -1.000000e+09 : f32
    %48 = vector.broadcast %cst_37 : f32 to vector<8x128xf32>
    %49 = arith.select %47, %45, %48 : vector<8x128xi1>, vector<8x128xf32>
    %c1 = arith.constant 1 : index
    %c0_38 = arith.constant 0 : index
    %c0_39 = arith.constant 0 : index
    %50 = vector.load %arg10[%c1, %c0_38, %c0_39] : memref<2x8x128xf32, #tpu.memory_space<vmem>>, vector<1x8x128xf32>
    %51 = vector.shape_cast %50 : vector<1x8x128xf32> to vector<8x128xf32>
    %52 = arith.addf %49, %51 : vector<8x128xf32>
    %cst_40 = arith.constant dense<0xFF800000> : vector<8xf32>
    %53 = vector.multi_reduction <maximumf>, %52, %cst_40 [1] : vector<8x128xf32> to vector<8xf32>
    %54 = vector.shape_cast %53 : vector<8xf32> to vector<8x1xf32>
    %55 = tpu.iota {dimensions = array<i32: 1>} : vector<8x128xi32>
    %56 = vector.broadcast %54 : vector<8x1xf32> to vector<8x128xf32>
    %57 = arith.cmpf oge, %52, %56 : vector<8x128xf32>
    %c128_i32_41 = arith.constant 128 : i32
    %58 = vector.broadcast %c128_i32_41 : i32 to vector<8x128xi32>
    %59 = arith.select %57, %55, %58 : vector<8x128xi1>, vector<8x128xi32>
    %cst_42 = arith.constant dense<2147483647> : vector<8xi32>
    %60 = vector.multi_reduction <minsi>, %59, %cst_42 [1] : vector<8x128xi32> to vector<8xi32>
    %61 = vector.shape_cast %60 : vector<8xi32> to vector<8x1xi32>
    %62 = vector.broadcast %61 : vector<8x1xi32> to vector<8x128xi32>
    %63 = arith.cmpi eq, %55, %62 : vector<8x128xi32>
    %64 = arith.extui %63 : vector<8x128xi1> to vector<8x128xi32>
    %65 = arith.sitofp %64 : vector<8x128xi32> to vector<8x128xf32>
    %cst_43 = arith.constant dense<0.000000e+00> : vector<8x32xf32>
    %66 = tpu.matmul %65, %7, %cst_43 {dimension_numbers = #tpu.dot_dimension_numbers<[1], [0], [0], [1], [0, 0, 1, 1], [], []>} : vector<8x128xf32>, vector<128x32xf32>, vector<8x32xf32> -> vector<8x32xf32>
    %cst_44 = arith.constant dense<0.000000e+00> : vector<8x128xf32>
    %67 = tpu.matmul %65, %8, %cst_44 {dimension_numbers = #tpu.dot_dimension_numbers<[1], [0], [0], [1], [0, 0, 1, 1], [], []>} : vector<8x128xf32>, vector<128x128xf32>, vector<8x128xf32> -> vector<8x128xf32>
    %cst_45 = arith.constant dense<0.000000e+00> : vector<8x32xf32>
    %68 = tpu.matmul %44, %9, %cst_45 {dimension_numbers = #tpu.dot_dimension_numbers<[1], [0], [0], [1], [0, 0, 1, 1], [], []>} : vector<8x32xf32>, vector<32x32xf32>, vector<8x32xf32> -> vector<8x32xf32>
    %cst_46 = arith.constant dense<0.000000e+00> : vector<8x32xf32>
    %69 = tpu.matmul %66, %10, %cst_46 {dimension_numbers = #tpu.dot_dimension_numbers<[1], [0], [0], [1], [0, 0, 1, 1], [], []>} : vector<8x32xf32>, vector<32x32xf32>, vector<8x32xf32> -> vector<8x32xf32>
    %70 = arith.addf %68, %69 : vector<8x32xf32>
    %71 = vector.broadcast %11 : vector<1x32xf32> to vector<8x32xf32>
    %72 = arith.addf %70, %71 : vector<8x32xf32>
    %73 = math.tanh %72 : vector<8x32xf32>
    %c1_47 = arith.constant 1 : index
    %c0_48 = arith.constant 0 : index
    %c0_49 = arith.constant 0 : index
    %74 = vector.load %arg11[%c1_47, %c0_48, %c0_49] : memref<2x8x32xf32, #tpu.memory_space<vmem>>, vector<1x8x32xf32>
    %75 = vector.shape_cast %74 : vector<1x8x32xf32> to vector<8x32xf32>
    %76 = arith.mulf %73, %75 : vector<8x32xf32>
    %cst_50 = arith.constant dense<0.000000e+00> : vector<8x128xf32>
    %77 = tpu.matmul %76, %6, %cst_50 {dimension_numbers = #tpu.dot_dimension_numbers<[1], [0], [0], [1], [0, 0, 1, 1], [], []>} : vector<8x32xf32>, vector<32x128xf32>, vector<8x128xf32> -> vector<8x128xf32>
    %cst_51 = arith.constant 0.000000e+00 : f32
    %78 = vector.broadcast %cst_51 : f32 to vector<8x128xf32>
    %79 = arith.cmpf ogt, %67, %78 : vector<8x128xf32>
    %cst_52 = arith.constant -1.000000e+09 : f32
    %80 = vector.broadcast %cst_52 : f32 to vector<8x128xf32>
    %81 = arith.select %79, %77, %80 : vector<8x128xi1>, vector<8x128xf32>
    %c0_53 = arith.constant 0 : index
    %c0_54 = arith.constant 0 : index
    %82 = vector.load %arg13[%c0_53, %c0_54] : memref<8x128xf32, #tpu.memory_space<vmem>>, vector<8x128xf32>
    tpu.vector_store %arg13[%c0_53, %c0_54], %81 {strides = array<i32>} : memref<8x128xf32, #tpu.memory_space<vmem>>, vector<8x128xf32>,
    return
  }
  func.func @transform_0(%arg0: i32) -> (i32, i32) {
    %c0_i32 = arith.constant 0 : i32
    %c0_i32_0 = arith.constant 0 : i32
    %c0_i32_1 = arith.constant 0 : i32
    return %c0_i32, %c0_i32_0 : i32, i32
  }
  func.func @transform_1(%arg0: i32) -> (i32, i32) {
    %c0_i32 = arith.constant 0 : i32
    %c0_i32_0 = arith.constant 0 : i32
    %c0_i32_1 = arith.constant 0 : i32
    return %c0_i32, %c0_i32_0 : i32, i32
  }
  func.func @transform_2(%arg0: i32) -> (i32, i32) {
    %c0_i32 = arith.constant 0 : i32
    %c0_i32_0 = arith.constant 0 : i32
    %c0_i32_1 = arith.constant 0 : i32
    return %c0_i32, %c0_i32_0 : i32, i32
  }
  func.func @transform_3(%arg0: i32) -> (i32, i32) {
    %c0_i32 = arith.constant 0 : i32
    %c0_i32_0 = arith.constant 0 : i32
    %c0_i32_1 = arith.constant 0 : i32
    return %c0_i32, %c0_i32_0 : i32, i32
  }
  func.func @transform_4(%arg0: i32) -> (i32, i32) {
    %c0_i32 = arith.constant 0 : i32
    %c0_i32_0 = arith.constant 0 : i32
    %c0_i32_1 = arith.constant 0 : i32
    return %c0_i32, %c0_i32_0 : i32, i32
  }
  func.func @transform_5(%arg0: i32) -> (i32, i32) {
    %c0_i32 = arith.constant 0 : i32
    %c0_i32_0 = arith.constant 0 : i32
    %c0_i32_1 = arith.constant 0 : i32
    return %c0_i32, %c0_i32_0 : i32, i32
  }
  func.func @transform_6(%arg0: i32) -> (i32, i32) {
    %c0_i32 = arith.constant 0 : i32
    %c0_i32_0 = arith.constant 0 : i32
    %c0_i32_1 = arith.constant 0 : i32
    return %c0_i32, %c0_i32_0 : i32, i32
  }
  func.func @transform_7(%arg0: i32) -> (i32, i32) {
    %c0_i32 = arith.constant 0 : i32
    %c0_i32_0 = arith.constant 0 : i32
    %c0_i32_1 = arith.constant 0 : i32
    return %c0_i32, %c0_i32_0 : i32, i32
  }
  func.func @transform_8(%arg0: i32) -> (i32, i32) {
    %c0_i32 = arith.constant 0 : i32
    %c0_i32_0 = arith.constant 0 : i32
    %c0_i32_1 = arith.constant 0 : i32
    return %c0_i32, %c0_i32_0 : i32, i32
  }
  func.func @transform_9(%arg0: i32) -> (i32, i32, i32) {
    %c0_i32 = arith.constant 0 : i32
    %c0_i32_0 = arith.constant 0 : i32
    %c0_i32_1 = arith.constant 0 : i32
    %c0_i32_2 = arith.constant 0 : i32
    return %c0_i32, %c0_i32_0, %c0_i32_1 : i32, i32, i32
  }
  func.func @transform_10(%arg0: i32) -> (i32, i32, i32) {
    %c0_i32 = arith.constant 0 : i32
    %c0_i32_0 = arith.constant 0 : i32
    %c0_i32_1 = arith.constant 0 : i32
    %c0_i32_2 = arith.constant 0 : i32
    return %c0_i32, %c0_i32_0, %c0_i32_1 : i32, i32, i32
  }
  func.func @transform_11(%arg0: i32) -> (i32, i32) {
    %c0_i32 = arith.constant 0 : i32
    %c0_i32_0 = arith.constant 0 : i32
    %c0_i32_1 = arith.constant 0 : i32
    return %c0_i32, %c0_i32_0 : i32, i32
  }
  func.func @transform_12(%arg0: i32) -> (i32, i32) {
    %c0_i32 = arith.constant 0 : i32
    %c0_i32_0 = arith.constant 0 : i32
    %c0_i32_1 = arith.constant 0 : i32
    return %c0_i32, %c0_i32_0 : i32, i32
  }
}

</mosaic_0001>

<bundles_post_ra>
// kernel: walking_memory_forward.1
= control target key start
LH: loop header
LB: loop body
LE: loop exit
PB: predicated region body
PF: predicated region fallthrough
CT: control target
= control target key end

     0   :  { %v1669_v0 = vmov 0.0|0.0   ;;  %vm1670_vm0 = vmmov 0   ;;  %v1671_v4 = vmov 0.0   ;;  %vm46_vm1 = vcmask 261120   ;;  %s2114_s1 = inlined_call_operand.vmem [shape: f32[32,32], index: 1, kind: input, shape index: {}]   ;;  %s2115_s3 = inlined_call_operand.vmem [shape: f32[32,128], index: 3, kind: input, shape index: {}]   ;;  %s2116_s4 = inlined_call_operand.vmem [shape: f32[32,32], index: 4, kind: input, shape index: {}]   ;;  %s2117_s0 = inlined_call_operand.vmem [shape: f32[8,32], index: 0, kind: input, shape index: {}]   ;;  %s2118_s8 = inlined_call_operand.vmem [shape: f32[8,128], index: 8, kind: input, shape index: {}]   ;;  %s2119_s9 = inlined_call_operand.vmem [shape: f32[2,8,128], index: 9, kind: input, shape index: {}]   ;;  %s2120_s11 = inlined_call_operand.vmem [shape: f32[128,128], index: 11, kind: input, shape index: {}]   ;;  %s2121_s2 = inlined_call_operand.vmem [shape: f32[128,32], index: 2, kind: input, shape index: {}]   ;;  %s2122_s5 = inlined_call_operand.vmem [shape: f32[32,32], index: 5, kind: input, shape index: {}]   ;;  %s2123_s6 = inlined_call_operand.vmem [shape: f32[32,32], index: 6, kind: input, shape index: {}]   ;;  %s2124_s7 = inlined_call_operand.vmem [shape: f32[1,32], index: 7, kind: input, shape index: {}]   ;;  %s2125_s10 = inlined_call_operand.vmem [shape: f32[2,8,32], index: 10, kind: input, shape index: {}]   ;;  %s2126_s12 = inlined_call_operand.vmem [shape: f32[8,128], index: 12, kind: output, shape index: {}]  }
   0x1   :  { %1507 = vmatprep.subr.bf16.mxu0 %v1669_v0  ;;  %v42_v1 = vld [vmem:[%s2114_s1] sm:$0xff]  ;;  %v43_v2 = vld [vmem:[%s2114_s1 + $0x8] sm:$0xff]  ;;  %1273 = vmatprep.mubr.msk.f32.mxu0 %vm1670_vm0, %v1671_v4  ;;  %v44_v7 = vld [vmem:[%s2114_s1 + $0x10] sm:$0xff]  ;;  %v347_v34 = vlaneseq }
   0x2   :  { %v125_v3 = vld [vmem:[%s2115_s3] sm:$0xff]  ;;  %v1508_v5 = vpack.c.bf16 %v43_v2, %v42_v1  ;;  %v126_v6 = vld [vmem:[%s2115_s3 + $0x8] sm:$0xff]  ;;  %v45_v8 = vld [vmem:[%s2114_s1 + $0x18] sm:$0xff] }
   0x3   :  { %v1513_v9 = vpack.c.bf16 %v126_v6, %v125_v3  ;;  %v127_v10 = vld [vmem:[%s2115_s3 + $0x10] sm:$0xff]  ;;  %v128_v11 = vld [vmem:[%s2115_s3 + $0x18] sm:$0xff]  ;;  %v1511_v12 = vpack.c.bf16 %v45_v8, %v44_v7  ;;  %v121_v14 = vld [vmem:[%s2116_s4] sm:$0xff]  ;;  %v1812_v35 = vand.u32 127, %v347_v34 }
   0x4   :  { %1509 = vmatpush3.bf16.msra.mxu0 %v1508_v5  ;;  %v1517_v13 = vpack.c.bf16 %v128_v11, %v127_v10  ;;  %1284 = vmatprep.mubr.msk.f32.mxu1 %vm46_vm1, %v121_v14  ;;  %v41_v15 = vld [vmem:[%s2117_s0] sm:$0xff]  ;;  %v122_v16 = vld [vmem:[%s2116_s4 + $0x8] sm:$0xff]  ;;  %v123_v17 = vld [vmem:[%s2116_s4 + $0x10] sm:$0xff] }
   0x5   :  { %1514 = vmatprep.subr.bf16.mxu1 %v1513_v9  ;;  %1510 = vmatprep.subr.bf16.mxu0 %v1669_v0  ;;  %v124_v18 = vld [vmem:[%s2116_s4 + $0x18] sm:$0xff]  ;;  %v267_v28 = vld [vmem:[%s2118_s8] sm:$0xff]  ;;  %v243_v41 = vld [vmem:[%s2120_s11 + $0x8] sm:$0xff] }
   0x6   :  { %1516 = vmatpush3.bf16.msra.mxu1 %v1513_v9  ;;  %vm341_vm2 = vcmp.gt.f32.partialorder %v267_v28, 0.0  ;;  %v343_v29 = vld [vmem:[%s2119_s9] sm:$0xff]  ;;  %v227_v44 = vld [vmem:[%s2121_s2 + $0x8] sm:$0xff]  ;;  %v244_v45 = vld [vmem:[%s2120_s11 + $0x10] sm:$0xff] }
   0x7   :  { %1518 = vmatprep.subr.bf16.mxu1 %v1517_v13  ;;  %v242_v40 = vld [vmem:[%s2120_s11] sm:$0xff]  ;;  %v245_v46 = vld [vmem:[%s2120_s11 + $0x18] sm:$0xff]  ;;  %v228_v48 = vld [vmem:[%s2121_s2 + $0x10] sm:$0xff] }
   0x8   :  { %1512 = vmatpush3.bf16.msra.mxu0 %v1511_v12  ;;  %v226_v42 = vld [vmem:[%s2121_s2] sm:$0xff]  ;;  %v1830_v43 = vpack.c.bf16 %v243_v41, %v242_v40  ;;  %v229_v49 = vld [vmem:[%s2121_s2 + $0x18] sm:$0xff]  ;;  %v1850_v50 = vpack.c.bf16 %v245_v46, %v244_v45  ;;  %v247_v53 = vld [vmem:[%s2120_s11 + $0x28] sm:$0xff] }
   0x9   :  { %1521 = vmatprep.subr.bf16.mxu0 %v1669_v0  ;;  %v1841_v47 = vpack.c.bf16 %v227_v44, %v226_v42  ;;  %v1854_v51 = vpack.c.bf16 %v229_v49, %v228_v48  ;;  %v246_v52 = vld [vmem:[%s2120_s11 + $0x20] sm:$0xff]  ;;  %v231_v55 = vld [vmem:[%s2121_s2 + $0x28] sm:$0xff]  ;;  %v248_v58 = vld [vmem:[%s2120_s11 + $0x30] sm:$0xff] }
   0xa   :  { %1520 = vmatpush3.bf16.msra.mxu1 %v1517_v13  ;;  %v230_v54 = vld [vmem:[%s2121_s2 + $0x20] sm:$0xff]  ;;  %v1870_v56 = vpack.c.bf16 %v247_v53, %v246_v52  ;;  %v249_v59 = vld [vmem:[%s2120_s11 + $0x38] sm:$0xff]  ;;  %v232_v60 = vld [vmem:[%s2121_s2 + $0x30] sm:$0xff]  ;;  %v1672_v53 = vmov 1.0  }
   0xb   :  { %1274 = vmatmul.mubr.msk.f32.vlgmr.msra.gmra.mrb[0].mxu0 %vm46_vm1, %v41_v15  ;;  %1527 = vmatprep.subr.bf16.mxu1 %v1669_v0  ;;  %v1874_v57 = vpack.c.bf16 %v231_v55, %v230_v54  ;;  %v233_v61 = vld [vmem:[%s2121_s2 + $0x38] sm:$0xff]  ;;  %v1890_v62 = vpack.c.bf16 %v249_v59, %v248_v58  ;;  %v250_v1 = vld [vmem:[%s2120_s11 + $0x40] sm:$0xff]  ;;  %v251_v2 = vld [vmem:[%s2120_s11 + $0x48] sm:$0xff] }
   0xc   :  { %1298 = vmatprep.mubr.msk.f32.mxu0 %vm1670_vm0, %v1671_v4  ;;  %v1894_v63 = vpack.c.bf16 %v233_v61, %v232_v60  ;;  %v234_v3 = vld [vmem:[%s2121_s2 + $0x40] sm:$0xff]  ;;  %v235_v5 = vld [vmem:[%s2121_s2 + $0x48] sm:$0xff]  ;;  %v1910_v6 = vpack.c.bf16 %v251_v2, %v250_v1  ;;  %v252_v8 = vld [vmem:[%s2120_s11 + $0x50] sm:$0xff] }
   0xd   :  { %1285 = vmatmul.mubr.msk.f32.vlgmr.msra.gmra.mrb[0].mxu1 %vm46_vm1, %v122_v16  ;;  %v1914_v7 = vpack.c.bf16 %v235_v5, %v234_v3  ;;  %v253_v9 = vld [vmem:[%s2120_s11 + $0x58] sm:$0xff]  ;;  %v236_v10 = vld [vmem:[%s2121_s2 + $0x50] sm:$0xff]  ;;  %v254_v14 = vld [vmem:[%s2120_s11 + $0x60] sm:$0xff] }
   0xe   :  { %1287 = vmatprep.mubr.msk.f32.mxu1 %vm46_vm1, %v123_v17  ;;  %1529 = vmatpush3.bf16.msra.mxu1 %v1841_v47  ;;  %v237_v11 = vld [vmem:[%s2121_s2 + $0x58] sm:$0xff]  ;;  %v1930_v12 = vpack.c.bf16 %v253_v9, %v252_v8  ;;  %v255_v15 = vld [vmem:[%s2120_s11 + $0x68] sm:$0xff]  ;;  %v238_v16 = vld [vmem:[%s2121_s2 + $0x60] sm:$0xff] }
   0xf   :  { %1530 = vmatprep.subr.bf16.mxu1 %v1669_v0  ;;  %v1934_v13 = vpack.c.bf16 %v237_v11, %v236_v10  ;;  %v239_v17 = vld [vmem:[%s2121_s2 + $0x68] sm:$0xff]  ;;  %v257_v28 = vld [vmem:[%s2120_s11 + $0x78] sm:$0xff]  ;;  %v262_v40 = vld [vmem:[%s2123_s6] sm:$0xff] }
  0x10   :  { %v263_v41 = vld [vmem:[%s2123_s6 + $0x8] sm:$0xff]  ;;  %v260_v45 = vld [vmem:[%s2122_s5 + $0x10] sm:$0xff]  ;;  %v261_v46 = vld [vmem:[%s2122_s5 + $0x18] sm:$0xff] }
  0x11   :  { %1288 = vmatmul.mubr.msk.f32.gmra.mrb[2].mxu1 %vm46_vm1, %v124_v18  ;;  %v1950_v18 = vpack.c.bf16 %v255_v15, %v254_v14  ;;  %v2000_v48 = vpack.c.bf16 %v263_v41, %v262_v40  ;;  %v264_v49 = vld [vmem:[%s2123_s6 + $0x10] sm:$0xff]  ;;  %v265_v52 = vld [vmem:[%s2123_s6 + $0x18] sm:$0xff]  ;;  %v2012_v54 = vpack.c.bf16 %v261_v46, %v260_v45  ;;  %v2056_v60 = vld [vmem:[%s2124_s7] ss:$0 sm:$0xff] }
  0x12   :  { %1333 = vmatprep.mubr.msk.f32.mxu1 %vm1670_vm0, %v1671_v4  ;;  %1532 = vmatpush3.bf16.msra.mxu1 %v1854_v51  ;;  %v2018_v55 = vpack.c.bf16 %v265_v52, %v264_v49  ;;  %v659_v3 = vld [vmem:[%s2125_s10] sm:$0xff] }
  0x13   :  { %1533 = vmatprep.subr.bf16.mxu1 %v1669_v0 }
  0x16   :  { %1535 = vmatpush3.bf16.msra.mxu1 %v1874_v57 }
  0x17   :  { %1536 = vmatprep.subr.bf16.mxu1 %v1669_v0 }
  0x1a   :  { %1538 = vmatpush3.bf16.msra.mxu1 %v1894_v63 }
  0x1b   :  { %1539 = vmatprep.subr.bf16.mxu1 %v1669_v0 }
  0x1e   :  { %1541 = vmatpush3.bf16.msra.mxu1 %v1914_v7 }
  0x1f   :  { %1542 = vmatprep.subr.bf16.mxu1 %v1669_v0 }
  0x22   :  { %1544 = vmatpush3.bf16.msra.mxu1 %v1934_v13 }
  0x23   :  { %1545 = vmatprep.subr.bf16.mxu1 %v1669_v0 }
  0xde   :  { %v116_v19 = vpop.f32.mrb[0].mxu0 }
  0xdf   :  { %1663 = vtanh.f32 %v116_v19  ;;  %v1275_v20 = vpop.f32.mrb[1].mxu0  ;;  %v1954_v19 = vpack.c.bf16 %v239_v17, %v238_v16 }
  0xe0   :  { %v1286_v21 = vpop.f32.mrb[0].mxu1 }
  0xe1   :  { %v207_v22 = vpop.f32.mrb[1].mxu1  ;;  %1547 = vmatpush3.bf16.msra.mxu1 %v1954_v19 }
  0xe2   :  { %v1792_v23 = vpack.c.bf16 %v1286_v21, %v207_v22  ;;  %1548 = vmatprep.subr.bf16.mxu1 %v1669_v0 }
  0xe4   :  { %v1289_v24 = vpop.f32.mrb[2].mxu1  ;;  %1523 = vmatpush3.bf16.msra.mxu0 %v1792_v23 }
  0xe5   :  { %v217_v25 = vpop.f32.mrb[3].mxu1  ;;  %1524 = vmatprep.subr.bf16.mxu0 %v1669_v0 }
  0xe6   :  { %v1796_v26 = vpack.c.bf16 %v1289_v24, %v217_v25  ;;  %v256_v25 = vld [vmem:[%s2120_s11 + $0x70] sm:$0xff] }
  0xe8   :  { %1526 = vmatpush3.bf16.msra.mxu0 %v1796_v26 }
  0xe9   :  { %v1799_v27 = vpop.eup %1663  ;;  %1551 = vmatprep.subr.bf16.mxu0 %v1669_v0 }
  0xeb   :  { %1299 = vmatmul.mubr.msk.f32.vlgmr.msra.gmra.mrb[2].mxu0 %vm46_vm1, %v1799_v27 }
  0xec   :  { %1368 = vmatprep.mubr.msk.f32.mxu0 %vm1670_vm0, %v1671_v4  ;;  %1553 = vmatpush3.bf16.msra.mxu0 %v1830_v43 }
  0xed   :  { %1554 = vmatprep.subr.bf16.mxu0 %v1669_v0 }
  0xf0   :  { %1556 = vmatpush3.bf16.msra.mxu0 %v1850_v50 }
  0xf1   :  { %1557 = vmatprep.subr.bf16.mxu0 %v1669_v0 }
  0xf4   :  { %1559 = vmatpush3.bf16.msra.mxu0 %v1870_v56 }
  0xf5   :  { %1560 = vmatprep.subr.bf16.mxu0 %v1669_v0 }
  0xf8   :  { %1562 = vmatpush3.bf16.msra.mxu0 %v1890_v62 }
  0xf9   :  { %1563 = vmatprep.subr.bf16.mxu0 %v1669_v0 }
  0xfc   :  { %1565 = vmatpush3.bf16.msra.mxu0 %v1910_v6 }
  0xfd   :  { %1566 = vmatprep.subr.bf16.mxu0 %v1669_v0 }
 0x100   :  { %1568 = vmatpush3.bf16.msra.mxu0 %v1930_v12 }
 0x101   :  { %1569 = vmatprep.subr.bf16.mxu0 %v1669_v0 }
 0x104   :  { %1571 = vmatpush3.bf16.msra.mxu0 %v1950_v18 }
 0x105   :  { %1572 = vmatprep.subr.bf16.mxu0 %v1669_v0 }
 0x1be   :  { %v337_v30 = vpop.f32.mrb[2].mxu0 }
 0x1bf   :  { %v342_v31 = vsel %vm341_vm2, %v337_v30, -1e+09  ;;  %v1300_v32 = vpop.f32.mrb[3].mxu0  ;;  %v240_v30 = vld [vmem:[%s2121_s2 + $0x70] sm:$0xff] }
 0x1c0   :  { %v344_v33 = vadd.f32 %v343_v29, %v342_v31  ;;  %v1969_v29 = vpack.c.bf16 %v257_v28, %v256_v25  ;;  %v241_v31 = vld [vmem:[%s2121_s2 + $0x78] sm:$0xff] }
 0x1c1   :  { %v1549_v32 = vpack.c.bf16 %v241_v31, %v240_v30 }
 0x1c2   :  { %345 = vmax.xlane.f32.xlu0 %v344_v33  ;;  %1574 = vmatpush3.bf16.msra.mxu0 %v1969_v29 }
 0x1c3   :  { %1550 = vmatpush3.bf16.msra.mxu1 %v1549_v32  ;;  %1581 = vmatprep.subr.bf16.mxu0 %v1669_v0 }
 0x1c4   :  { %1575 = vmatprep.subr.bf16.mxu1 %v1669_v0 }
 0x24f   :  { %v346_v36 = vpop.xlane.xlu0 %345 }
 0x250   :  { %vm349_vm3 = vcmp.ge.f32.partialorder %v344_v33, %v346_v36  ;;  %v258_v36 = vld [vmem:[%s2122_s5] sm:$0xff] }
 0x251   :  { %v1815_v37 = vsel %vm349_vm3, %v1812_v35, 128 }
 0x252   :  { %v352_v38 = vshra.s32 %v1815_v37, 16  ;;  %v351_v20 = vand.u32 65535, %v1815_v37  ;;  %v259_v37 = vld [vmem:[%s2122_s5 + $0x8] sm:$0xff] }
 0x253   :  { %v1992_v44 = vpack.c.bf16 %v259_v37, %v258_v36 }
 0x254   :  { %v1818_v39 = vcvt.s32.f32 %v352_v38  ;;  %v353_v22 = vcvt.s32.f32 %v351_v20 }
 0x256   :  { %355 = vmin.xlane.f32.xlu0 %v1818_v39 }
 0x2e3   :  { %v356_v21 = vpop.xlane.xlu0 %355 }
 0x2e4   :  { %vm357_vm4 = vcmp.eq.f32.partialorder %v1818_v39, %v356_v21  ;;  %v362_v33 = vcvt.f32.s32 %v356_v21 }
 0x2e5   :  { %v358_v24 = vsel %vm357_vm4, %v353_v22, inf }
 0x2e6   :  { %359 = vmin.xlane.f32.xlu1 %v358_v24  ;;  %v363_v38 = vshll.u32 %v362_v33, 16  ;;  %v1147_v33 = vld [vmem:[%s2125_s10 + $0x8] sm:$0xff] }
 0x373   :  { %v360_v34 = vpop.xlane.xlu1 %359 }
 0x374   :  { %v361_v39 = vcvt.f32.s32 %v360_v34 }
 0x376   :  { %v364_v42 = vadd.s32 %v363_v38, %v361_v39 }
 0x378   :  { %vm365_vm5 = vcmp.eq.s32.totalorder %v1812_v35, %v364_v42 }
 0x379   :  { %1334 = vmatmul.mubr.msk.f32.vlgmr.msra.gmra.mrb[4].mxu1 %vm365_vm5, %v1672_v53  ;;  %1369 = vmatmul.mubr.msk.f32.vlgmr.msra.gmra.mrb[4].mxu0 %vm365_vm5, %v1672_v53 }
 0x37a   :  { %1583 = vmatpush3.bf16.msra.mxu0 %v1992_v44  ;;  %1390 = vmatprep.mubr.msk.f32.mxu0 %vm1670_vm0, %v1671_v4 }
 0x37b   :  { %1584 = vmatprep.subr.bf16.mxu0 %v1669_v0  ;;  %1577 = vmatpush3.bf16.msra.mxu1 %v2000_v48 }
 0x37c   :  { %1578 = vmatprep.subr.bf16.mxu1 %v1669_v0  ;;  %1379 = vmatprep.mubr.msk.f32.mxu1 %vm1670_vm0, %v1671_v4 }
 0x37e   :  { %1586 = vmatpush3.bf16.msra.mxu0 %v2012_v54 }
 0x37f   :  { %1580 = vmatpush3.bf16.msra.mxu1 %v2018_v55  ;;  %1593 = vmatprep.subr.bf16.mxu0 %v1669_v0 }
 0x380   :  { %1587 = vmatprep.subr.bf16.mxu1 %v1669_v0 }
 0x381   :  { %1391 = vmatmul.mubr.msk.f32.vlgmr.msra.gmra.mrb[6].mxu0 %vm46_vm1, %v1799_v27 }
 0x382   :  { %1595 = vmatpush3.bf16.msra.mxu0 %v1841_v47  ;;  %1436 = vmatprep.mubr.msk.f32.mxu0 %vm1670_vm0, %v1671_v4 }
 0x383   :  { %1596 = vmatprep.subr.bf16.mxu0 %v1669_v0 }
 0x386   :  { %1598 = vmatpush3.bf16.msra.mxu0 %v1854_v51 }
 0x387   :  { %1599 = vmatprep.subr.bf16.mxu0 %v1669_v0 }
 0x38a   :  { %1601 = vmatpush3.bf16.msra.mxu0 %v1874_v57 }
 0x38b   :  { %1602 = vmatprep.subr.bf16.mxu0 %v1669_v0 }
 0x38e   :  { %1604 = vmatpush3.bf16.msra.mxu0 %v1894_v63 }
 0x38f   :  { %1605 = vmatprep.subr.bf16.mxu0 %v1669_v0 }
 0x392   :  { %1607 = vmatpush3.bf16.msra.mxu0 %v1914_v7 }
 0x393   :  { %1608 = vmatprep.subr.bf16.mxu0 %v1669_v0 }
 0x396   :  { %1610 = vmatpush3.bf16.msra.mxu0 %v1934_v13 }
 0x397   :  { %1611 = vmatprep.subr.bf16.mxu0 %v1669_v0 }
 0x39a   :  { %1613 = vmatpush3.bf16.msra.mxu0 %v1954_v19 }
 0x39b   :  { %1614 = vmatprep.subr.bf16.mxu0 %v1669_v0 }
 0x39e   :  { %1616 = vmatpush3.bf16.msra.mxu0 %v1549_v32 }
 0x39f   :  { %1641 = vmatprep.subr.bf16.mxu0 %v1669_v0 }
 0x44c   :  { %v434_v27 = vpop.f32.mrb[4].mxu1  ;;  %v504_v47 = vpop.f32.mrb[4].mxu0 }
 0x44d   :  { %v1335_v51 = vpop.f32.mrb[5].mxu1  ;;  %v1370_v57 = vpop.f32.mrb[5].mxu0  ;;  %1380 = vmatmul.mubr.msk.f32.vlgmr.msra.gmra.mrb[6].mxu1 %vm46_vm1, %v434_v27  ;;  %vm734_vm6 = vcmp.gt.f32.partialorder %v504_v47, 0.0 }
 0x44e   :  { %1589 = vmatpush3.bf16.msra.mxu1 %v1792_v23  ;;  %1401 = vmatprep.mubr.msk.f32.mxu1 %vm1670_vm0, %v1671_v4 }
 0x44f   :  { %1590 = vmatprep.subr.bf16.mxu1 %v1669_v0 }
 0x452   :  { %1592 = vmatpush3.bf16.msra.mxu1 %v1796_v26 }
 0x453   :  { %1617 = vmatprep.subr.bf16.mxu1 %v1669_v0 }
 0x454   :  { %v647_v58 = vpop.f32.mrb[6].mxu0 }
 0x455   :  { %v1392_v59 = vpop.f32.mrb[7].mxu0 }
 0x520   :  { %v577_v61 = vpop.f32.mrb[6].mxu1 }
 0x521   :  { %v648_v63 = vadd.f32 %v647_v58, %v577_v61  ;;  %v1381_v1 = vpop.f32.mrb[7].mxu1 }
 0x523   :  { %v657_v2 = vadd.f32 %v2056_v60, %v648_v63 }
 0x525   :  { %1665 = vtanh.f32 %v657_v2 }
 0x52f   :  { %v1666_v5 = vpop.eup %1665 }
 0x530   :  { %v660_v7 = vmul.f32 %v1666_v5, %v659_v3 }
 0x532   :  { %1402 = vmatmul.mubr.msk.f32.vlgmr.msra.gmra.mrb[8].mxu1 %vm46_vm1, %v660_v7 }
 0x533   :  { %1619 = vmatpush3.bf16.msra.mxu1 %v1830_v43  ;;  %1471 = vmatprep.mubr.msk.f32.mxu1 %vm1670_vm0, %v1671_v4  ;;  %v1141_v43 = vld [vmem:[%s2119_s9 + $0x8] sm:$0xff] }
 0x534   :  { %1620 = vmatprep.subr.bf16.mxu1 %v1669_v0 }
 0x537   :  { %1622 = vmatpush3.bf16.msra.mxu1 %v1850_v50 }
 0x538   :  { %1623 = vmatprep.subr.bf16.mxu1 %v1669_v0 }
 0x53b   :  { %1625 = vmatpush3.bf16.msra.mxu1 %v1870_v56 }
 0x53c   :  { %1626 = vmatprep.subr.bf16.mxu1 %v1669_v0 }
 0x53f   :  { %1628 = vmatpush3.bf16.msra.mxu1 %v1890_v62 }
 0x540   :  { %1629 = vmatprep.subr.bf16.mxu1 %v1669_v0 }
 0x543   :  { %1631 = vmatpush3.bf16.msra.mxu1 %v1910_v6 }
 0x544   :  { %1632 = vmatprep.subr.bf16.mxu1 %v1669_v0 }
 0x547   :  { %1634 = vmatpush3.bf16.msra.mxu1 %v1930_v12 }
 0x548   :  { %1635 = vmatprep.subr.bf16.mxu1 %v1669_v0 }
 0x54b   :  { %1637 = vmatpush3.bf16.msra.mxu1 %v1950_v18 }
 0x54c   :  { %1638 = vmatprep.subr.bf16.mxu1 %v1669_v0 }
 0x54f   :  { %1640 = vmatpush3.bf16.msra.mxu1 %v1969_v29 }
 0x550   :  { %1647 = vmatprep.subr.bf16.mxu1 %v1669_v0 }
 0x605   :  { %v730_v50 = vpop.f32.mrb[8].mxu1 }
 0x606   :  { %v735_v56 = vsel %vm734_vm6, %v730_v50, -1e+09  ;;  %v1403_v62 = vpop.f32.mrb[9].mxu1 }
 0x607   :  { %v738_v6 = vadd.f32 %v1141_v43, %v735_v56 }
 0x609   :  { %739 = vmax.xlane.f32.xlu1 %v738_v6 }
 0x696   :  { %v740_v8 = vpop.xlane.xlu1 %739 }
 0x697   :  { %vm741_vm7 = vcmp.ge.f32.partialorder %v738_v6, %v740_v8 }
 0x698   :  { %v742_v9 = vsel %vm741_vm7, %v1812_v35, 128 }
 0x699   :  { %v744_v10 = vshra.s32 %v742_v9, 16  ;;  %v743_v12 = vand.u32 65535, %v742_v9 }
 0x69b   :  { %v746_v11 = vcvt.s32.f32 %v744_v10  ;;  %v745_v14 = vcvt.s32.f32 %v743_v12 }
 0x69d   :  { %747 = vmin.xlane.f32.xlu0 %v746_v11 }
 0x72a   :  { %v748_v13 = vpop.xlane.xlu0 %747 }
 0x72b   :  { %vm749_vm8 = vcmp.eq.f32.partialorder %v746_v11, %v748_v13  ;;  %v754_v16 = vcvt.f32.s32 %v748_v13 }
 0x72c   :  { %v750_v15 = vsel %vm749_vm8, %v745_v14, inf }
 0x72d   :  { %751 = vmin.xlane.f32.xlu1 %v750_v15  ;;  %v755_v18 = vshll.u32 %v754_v16, 16 }
 0x7ba   :  { %v752_v17 = vpop.xlane.xlu1 %751 }
 0x7bb   :  { %v753_v19 = vcvt.f32.s32 %v752_v17 }
 0x7bd   :  { %v756_v20 = vadd.s32 %v755_v18, %v753_v19 }
 0x7bf   :  { %vm757_vm9 = vcmp.eq.s32.totalorder %v1812_v35, %v756_v20 }
 0x7c0   :  { %1437 = vmatmul.mubr.msk.f32.vlgmr.msra.gmra.mrb[8].mxu0 %vm757_vm9, %v1672_v53  ;;  %1472 = vmatmul.mubr.msk.f32.vlgmr.msra.gmra.mrb[10].mxu1 %vm757_vm9, %v1672_v53 }
 0x7c1   :  { %1649 = vmatpush3.bf16.msra.mxu1 %v1992_v44  ;;  %1493 = vmatprep.mubr.msk.f32.mxu1 %vm1670_vm0, %v1671_v4 }
 0x7c2   :  { %1650 = vmatprep.subr.bf16.mxu1 %v1669_v0  ;;  %1643 = vmatpush3.bf16.msra.mxu0 %v2000_v48 }
 0x7c3   :  { %1644 = vmatprep.subr.bf16.mxu0 %v1669_v0  ;;  %1482 = vmatprep.mubr.msk.f32.mxu0 %vm1670_vm0, %v1671_v4 }
 0x7c5   :  { %1652 = vmatpush3.bf16.msra.mxu1 %v2012_v54 }
 0x7c6   :  { %1646 = vmatpush3.bf16.msra.mxu0 %v2018_v55 }
 0x7c7   :  { %1653 = vmatprep.subr.bf16.mxu0 %v1669_v0 }
 0x7c8   :  { %1494 = vmatmul.mubr.msk.f32.vlgmr.msra.gmra.mrb[12].mxu1 %vm46_vm1, %v660_v7 }
 0x893   :  { %v826_v35 = vpop.f32.mrb[8].mxu0  ;;  %v896_v21 = vpop.f32.mrb[10].mxu1 }
 0x894   :  { %v1438_v22 = vpop.f32.mrb[9].mxu0  ;;  %v1473_v24 = vpop.f32.mrb[11].mxu1  ;;  %1483 = vmatmul.mubr.msk.f32.vlgmr.msra.gmra.mrb[10].mxu0 %vm46_vm1, %v826_v35  ;;  %vm1121_vm10 = vcmp.gt.f32.partialorder %v896_v21, 0.0 }
 0x895   :  { %1655 = vmatpush3.bf16.msra.mxu0 %v1792_v23  ;;  %1504 = vmatprep.mubr.msk.f32.mxu0 %vm1670_vm0, %v1671_v4 }
 0x896   :  { %1656 = vmatprep.subr.bf16.mxu0 %v1669_v0 }
 0x899   :  { %1658 = vmatpush3.bf16.msra.mxu0 %v1796_v26 }
 0x89b   :  { %v1039_v25 = vpop.f32.mrb[12].mxu1 }
 0x89c   :  { %v1495_v28 = vpop.f32.mrb[13].mxu1 }
 0x967   :  { %v969_v29 = vpop.f32.mrb[10].mxu0 }
 0x968   :  { %v1040_v30 = vadd.f32 %v1039_v25, %v969_v29  ;;  %v1484_v31 = vpop.f32.mrb[11].mxu0 }
 0x96a   :  { %v1043_v32 = vadd.f32 %v2056_v60, %v1040_v30 }
 0x96c   :  { %1667 = vtanh.f32 %v1043_v32 }
 0x976   :  { %v1668_v23 = vpop.eup %1667 }
 0x977   :  { %v1047_v34 = vmul.f32 %v1668_v23, %v1147_v33 }
 0x979   :  { %1505 = vmatmul.mubr.msk.f32.vlgmr.msra.gmra.mrb[12].mxu0 %vm46_vm1, %v1047_v34 }
 0xa4c   :  { %v1117_v0 = vpop.f32.mrb[12].mxu0 }
 0xa4d   :  { %v1122_v4 = vsel %vm1121_vm10, %v1117_v0, -1e+09  ;;  %v1506_v26 = vpop.f32.mrb[13].mxu0 }
 0xa4e   :  { %1123 = vst [vmem:[%s2126_s12] sm:$0xff] %v1122_v4 }

</bundles_post_ra>
